<compile_context>
chip_gen: v6e
topology: v6e:2x2x1
jax: 0.10.0
libtpu: 0.0.40
codegen_flags: <defaults>
</compile_context>

<pallas_src>
import jax
import jax.numpy as jnp
from jax.experimental import pallas as pl
from jax.experimental.pallas import tpu as pltpu

_DEFAULT_BLOCK_ELEMS = 512 * 1024      # ~2 MiB per operand block at f32
_DEFAULT_MIN_KERNEL_ELEMS = 32 * 1024  # below this, plain fused JAX is faster


def _convex_kernel(lam_ref, x1_ref, x2_ref, o_ref):
    # lam_ref lives in SMEM as a (1, 1) f32 scalar parameter.
    lam = lam_ref[0, 0]
    x1 = x1_ref[...].astype(jnp.float32)
    x2 = x2_ref[...].astype(jnp.float32)
    o_ref[...] = ((1.0 - lam) * x1 + lam * x2).astype(o_ref.dtype)


def concatenate_convex(
    input1,
    input2,
    lam,
    *,
    min_kernel_elems: int = _DEFAULT_MIN_KERNEL_ELEMS,
    block_elems: int = _DEFAULT_BLOCK_ELEMS,
):
    """Convex combination: (1 - lam) * input1 + lam * input2.

    input1/input2: arrays of identical shape (e.g. NCHW).
    lam: (1, 1) float32 parameter.
    """
    assert input1.shape == input2.shape, "inputs must have identical shapes"
    assert input1.dtype == input2.dtype, "inputs must have identical dtypes"
    orig_shape = input1.shape
    dtype = input1.dtype
    n = int(input1.size)

    lam_s = lam.reshape(1, 1).astype(jnp.float32)

    # Tiny activations: a pallas_call's launch overhead dwarfs one vreg of VPU
    # work; let XLA fuse the elementwise expression into its neighbors.
    if n < min_kernel_elems:
        l = lam_s[0, 0]
        return ((1.0 - l) * input1 + l * input2).astype(dtype)

    # Pick the widest lane width that divides n so no padding copy is needed;
    # otherwise fall back to 128 lanes with a minimal tail pad.
    lanes = None
    for w in (512, 256, 128):
        if n % w == 0:
            lanes = w
            break

    x1 = input1.reshape(-1)
    x2 = input2.reshape(-1)
    if lanes is None:
        lanes = 128
        pad = (-n) % lanes
        x1 = jnp.pad(x1, (0, pad))
        x2 = jnp.pad(x2, (0, pad))

    rows = x1.size // lanes
    x1 = x1.reshape(rows, lanes)
    x2 = x2.reshape(rows, lanes)

    # Row tile: ~block_elems elements per operand block, multiple of 32
    # sublanes so the same tiling works for f32 / bf16 / int8.
    row_tile = max(32, (block_elems // lanes) // 32 * 32)
    if rows <= row_tile:
        # Single block covering the whole array (full-extent block dims are
        # always legal regardless of (8,128) divisibility).
        row_tile = rows
        grid = (1,)
    else:
        # Ragged last block is masked by Pallas automatically.
        grid = (pl.cdiv(rows, row_tile),)

    itemsize = jnp.dtype(dtype).itemsize
    cost = pl.CostEstimate(
        flops=3 * n,
        transcendentals=0,
        bytes_accessed=3 * n * itemsize,
    )

    out = pl.pallas_call(
        _convex_kernel,
        out_shape=jax.ShapeDtypeStruct((rows, lanes), dtype),
        grid_spec=pltpu.PrefetchScalarGridSpec(
            num_scalar_prefetch=0,
            grid=grid,
            in_specs=[
                pl.BlockSpec(memory_space=pltpu.SMEM),  # lambda (1,1) scalar
                pl.BlockSpec((row_tile, lanes), lambda i: (i, 0)),
                pl.BlockSpec((row_tile, lanes), lambda i: (i, 0)),
            ],
            out_specs=pl.BlockSpec((row_tile, lanes), lambda i: (i, 0)),
        ),
        compiler_params=pltpu.CompilerParams(
            dimension_semantics=("parallel",),
            vmem_limit_bytes=32 * 1024 * 1024,
        ),
        cost_estimate=cost,
    )(lam_s, x1, x2)

    out_flat = out.reshape(-1)
    if out_flat.size != n:
        out_flat = out_flat[:n]
    return out_flat.reshape(orig_shape)


if __name__ == "__main__":
    key = jax.random.PRNGKey(0)
    k1, k2, k3, k4, k5, k6 = jax.random.split(key, 6)

    # Small NCHW inputs, consistent with a conv-feature merge.
    input1 = jax.random.normal(k1, (2, 4, 16, 16), dtype=jnp.float32)
    input2 = jax.random.normal(k2, (2, 4, 16, 16), dtype=jnp.float32)

    # Parameter: nn.Parameter(torch.zeros(1, 1)) -> deterministic zeros init.
    lam = jnp.zeros((1, 1), dtype=jnp.float32)

    # Force the Pallas kernel path even at this small size.
    out = jax.block_until_ready(
        concatenate_convex(input1, input2, lam, min_kernel_elems=0)
    )
    ref = (1.0 - lam[0, 0]) * input1 + lam[0, 0] * input2
    assert out.shape == input1.shape
    assert jnp.allclose(out, ref, atol=1e-6), "mismatch vs reference (lam=0)"

    # Nonzero lambda through the kernel path.
    lam2 = jnp.full((1, 1), 0.3, dtype=jnp.float32)
    out2 = jax.block_until_ready(
        concatenate_convex(input1, input2, lam2, min_kernel_elems=0)
    )
    ref2 = 0.7 * input1 + 0.3 * input2
    assert jnp.allclose(out2, ref2, atol=1e-6), "mismatch vs reference (lam=0.3)"

    # Ragged total size (not a multiple of 128) -> minimal-pad path.
    a = jax.random.normal(k3, (3, 5, 17, 19), dtype=jnp.float32)
    b = jax.random.normal(k4, (3, 5, 17, 19), dtype=jnp.float32)
    out3 = jax.block_until_ready(
        concatenate_convex(a, b, lam2, min_kernel_elems=0)
    )
    assert jnp.allclose(out3, 0.7 * a + 0.3 * b, atol=1e-6), "mismatch (ragged)"

    # Multi-block tiled path: force a small block size so grid > 1.
    c = jax.random.normal(k5, (2, 8, 64, 64), dtype=jnp.float32)
    d = jax.random.normal(k6, (2, 8, 64, 64), dtype=jnp.float32)
    out4 = jax.block_until_ready(
        concatenate_convex(c, d, lam2, min_kernel_elems=0, block_elems=4096)
    )
    assert jnp.allclose(out4, 0.7 * c + 0.3 * d, atol=1e-6), "mismatch (tiled)"

    # Default dispatch: tiny inputs take the fused-JAX fast path.
    out5 = jax.block_until_ready(concatenate_convex(input1, input2, lam2))
    assert jnp.allclose(out5, ref2, atol=1e-6), "mismatch (fast path)"

    print("KERNEL_OK")
</pallas_src>

<mosaic_0001>
module attributes {stable_mosaic.version = 11 : i64} {
  func.func @_convex_kernel(%arg0: i32, %arg1: memref<1x1xf32, #tpu.memory_space<smem>>, %arg2: memref<4x512xf32, #tpu.memory_space<vmem>>, %arg3: memref<4x512xf32, #tpu.memory_space<vmem>>, %arg4: memref<4x512xf32, #tpu.memory_space<vmem>>) attributes {dimension_semantics = [#tpu.dimension_semantics<parallel>], iteration_bounds = array<i64: 1>, scalar_prefetch = 0 : i64, scratch_operands = 0 : i64, tpu.core_type = #tpu.core_type<tc>, window_params = [{transform_indices = @transform_0, window_bounds = array<i64: 1, 1>}, {transform_indices = @transform_1, window_bounds = array<i64: 4, 512>}, {transform_indices = @transform_2, window_bounds = array<i64: 4, 512>}, {transform_indices = @transform_3, window_bounds = array<i64: 4, 512>}]} {
    %c0 = arith.constant 0 : index
    %c0_0 = arith.constant 0 : index
    %0 = memref.load %arg1[%c0, %c0_0] : memref<1x1xf32, #tpu.memory_space<smem>>
    %c0_1 = arith.constant 0 : index
    %c0_2 = arith.constant 0 : index
    %1 = vector.load %arg2[%c0_1, %c0_2] : memref<4x512xf32, #tpu.memory_space<vmem>>, vector<4x512xf32>
    %c0_3 = arith.constant 0 : index
    %c0_4 = arith.constant 0 : index
    %2 = vector.load %arg3[%c0_3, %c0_4] : memref<4x512xf32, #tpu.memory_space<vmem>>, vector<4x512xf32>
    %cst = arith.constant 1.000000e+00 : f32
    %3 = arith.subf %cst, %0 : f32
    %4 = vector.broadcast %3 : f32 to vector<4x512xf32>
    %5 = arith.mulf %4, %1 : vector<4x512xf32>
    %6 = vector.broadcast %0 : f32 to vector<4x512xf32>
    %7 = arith.mulf %6, %2 : vector<4x512xf32>
    %8 = arith.addf %5, %7 : vector<4x512xf32>
    %c0_5 = arith.constant 0 : index
    %c0_6 = arith.constant 0 : index
    %9 = vector.load %arg4[%c0_5, %c0_6] : memref<4x512xf32, #tpu.memory_space<vmem>>, vector<4x512xf32>
    tpu.vector_store %arg4[%c0_5, %c0_6], %8 {strides = array<i32>} : memref<4x512xf32, #tpu.memory_space<vmem>>, vector<4x512xf32>,
    return
  }
  func.func @transform_0(%arg0: i32) -> (i32, i32) {
    %c0_i32 = arith.constant 0 : i32
    %c0_i32_0 = arith.constant 0 : i32
    %c0_i32_1 = arith.constant 0 : i32
    return %c0_i32, %c0_i32_0 : i32, i32
  }
  func.func @transform_1(%arg0: i32) -> (i32, i32) {
    %c0_i32 = arith.constant 0 : i32
    %c0_i32_0 = arith.constant 0 : i32
    return %arg0, %c0_i32 : i32, i32
  }
  func.func @transform_2(%arg0: i32) -> (i32, i32) {
    %c0_i32 = arith.constant 0 : i32
    %c0_i32_0 = arith.constant 0 : i32
    return %arg0, %c0_i32 : i32, i32
  }
  func.func @transform_3(%arg0: i32) -> (i32, i32) {
    %c0_i32 = arith.constant 0 : i32
    %c0_i32_0 = arith.constant 0 : i32
    return %arg0, %c0_i32 : i32, i32
  }
}

</mosaic_0001>

<bundles_post_ra>
// kernel: tpu_custom_call.1
= control target key start
LH: loop header
LB: loop body
LE: loop exit
PB: predicated region body
PF: predicated region fallthrough
CT: control target
= control target key end

     0   :  { %9 = vsyncpa [#allocation4], 0  ;;  %s179_s0 = inlined_call_operand.<no memory space> [shape: f32[1,1], index: 0, kind: input, shape index: {}]   ;;  %s180_s1 = inlined_call_operand.hbm [shape: f32[4,512], index: 1, kind: input, shape index: {}]   ;;  %s181_s2 = inlined_call_operand.hbm [shape: f32[4,512], index: 2, kind: input, shape index: {}]   ;;  %s182_s3 = inlined_call_operand.hbm [shape: f32[4,512], index: 3, kind: output, shape index: {}]  }
   0x1   :  { %10 = vsyncpa [#allocation7], 0 }
   0x2   :  { %11 = vsyncpa [#allocation5], 0  ;;  %s141_s12 = smov [#allocation3]   ;;  %s142_s14 = smov [#allocation6]  }
   0x3   :  { %s20_s13 = sshll.u32 %s141_s12, 4  ;;  %s30_s15 = sshll.u32 %s142_s14, 4  ;;  %s21_s13 = int_to_ptr.vmem [resolvable:$true] %s20_s13  ;;  %s31_s15 = int_to_ptr.vmem [resolvable:$true] %s30_s15 }
   0x4   :  { %s83_s16 = scalar_lea.vmem %s21_s13, 256  ;;  %p88_p1 = scmp.lt.s32.totalorder %s21_s13, %s21_s13 }
   0x5   :  { %p84_p0 = scmp.ne.s32.totalorder %s21_s13, %s83_s16  ;;  %p89_p2 = scmp.lt.s32.totalorder %s83_s16, %s83_s16 }
   0x7   :  { %p90_p3 = por %p89_p2, %p88_p1 }
   0x9   :  { %p91_p4 = pnand %p90_p3, %p84_p0 }
   0xb   :  { %94 = shalt.err (!%p91_p4)
}
   0xc   :  { %23 = dma.hbm_to_vmem [thread:$0]  %s180_s1, 256, %s21_s13, [#allocation4]  }
   0xd   :  { %s103_s19 = scalar_lea.vmem %s31_s15, 256  ;;  %p108_p6 = scmp.lt.s32.totalorder %s31_s15, %s31_s15 }
   0xe   :  { %p104_p5 = scmp.ne.s32.totalorder %s31_s15, %s103_s19  ;;  %p109_p7 = scmp.lt.s32.totalorder %s103_s19, %s103_s19 }
  0x10   :  { %p110_p8 = por %p109_p7, %p108_p6 }
  0x12   :  { %p111_p9 = pnand %p110_p8, %p104_p5 }
  0x14   :  { %114 = shalt.err (!%p111_p9)
}
  0x15   :  { %33 = dma.hbm_to_vmem [thread:$0]  %s181_s2, 256, %s31_s15, [#allocation7]  }
  0x16   :  { %135 = dma.done.wait [#allocation4], 256  }
  0x17   :  { %136 = vsyncadd [#allocation4], 4294967040 }
  0x18   :  { %137 = dma.done.wait [#allocation7], 256  }
  0x19   :  { %138 = vsyncadd [#allocation7], 4294967040  ;;  %s45_s24 = ssub.f32 1.0, %s179_s0  ;;  %v49_v1 = vstv %s179_s0  ;;  %v41_v2 = vld [vmem:[#allocation3] sm:$0xff]  ;;  %v43_v3 = vld [vmem:[#allocation6] sm:$0xff]  ;;  %s143_s2 = smov [#allocation8]  }
  0x1a   :  { %v42_v4 = vld [vmem:[#allocation3 + $0x8] sm:$0xff]  ;;  %v50_v6 = vmul.f32 %v49_v1, %v43_v3  ;;  %v44_v7 = vld [vmem:[#allocation6 + $0x8] sm:$0xff]  ;;  %s62_s26 = sshll.u32 %s143_s2, 4  ;;  %s63_s26 = int_to_ptr.vmem [resolvable:$true] %s62_s26 }
  0x1b   :  { %v46_v0 = vstv %s45_s24  ;;  %v51_v9 = vmul.f32 %v49_v1, %v44_v7  ;;  %s115_s27 = scalar_lea.vmem %s63_s26, 256  ;;  %p120_p11 = scmp.lt.s32.totalorder %s63_s26, %s63_s26 }
  0x1c   :  { %v47_v5 = vmul.f32 %v46_v0, %v41_v2  ;;  %v48_v8 = vmul.f32 %v46_v0, %v42_v4  ;;  %p116_p10 = scmp.ne.s32.totalorder %s63_s26, %s115_s27  ;;  %p121_p12 = scmp.lt.s32.totalorder %s115_s27, %s115_s27 }
  0x1e   :  { %v52_v10 = vadd.f32 %v50_v6, %v47_v5  ;;  %v53_v11 = vadd.f32 %v51_v9, %v48_v8  ;;  %p122_p13 = por %p121_p12, %p120_p11 }
  0x20   :  { %54 = vst [vmem:[#allocation8] sm:$0xff] %v52_v10  ;;  %55 = vst [vmem:[#allocation8 + $0x8] sm:$0xff] %v53_v11  ;;  %p123_p0 = pnand %p122_p13, %p116_p10 }
  0x22   :  { %126 = shalt.err (!%p123_p0)
}
  0x23   :  { %65 = dma.vmem_to_hbm [thread:$0]  %s63_s26, 256, %s182_s3, [#allocation5]  }
  0x24   :  { %139 = dma.done.wait [#allocation5], 256  }
  0x25   :  { %140 = vsyncadd [#allocation5], 4294967040 }
  0x26   :  { %69 = vsyncpa [#allocation4], 1 }
  0x27   :  { %70 = vsyncpa [#allocation7], 1 }
  0x28   :  { %71 = vsyncpa [#allocation5], 1 }

</bundles_post_ra>
